<compile_context>
chip_gen: v6e
topology: v6e:2x2x1
jax: 0.10.0
libtpu: 0.0.40
codegen_flags: <defaults>
</compile_context>

<pallas_src>
import functools

import jax
import jax.numpy as jnp
from jax.experimental import pallas as pl
from jax.experimental.pallas import tpu as pltpu

HIDDEN_SIZE = 128
EPS = 1e-6

_TARGET_BLOCK_BYTES = 4 << 20     # ~4 MiB x-block => ~16 MiB double-buffered in+out
_SINGLE_BLOCK_MAX_ROWS = 512      # below this, pipelining gains < per-step overhead
_MIN_GRID_STEPS = 8               # >= 4 steps per TC on v7x megacore
_VMEM_LIMIT_BYTES = 32 << 20      # safe on v5e/v6e/v7x; above v5e's 16 MiB scoped default


def _rmsnorm_kernel(x_ref, w_ref, o_ref, *, eps):
    # Upcast to float32 (matches hidden_states.to(torch.float32) in torch).
    x = x_ref[...].astype(jnp.float32)                 # (tile, hidden)
    var = jnp.mean(x * x, axis=-1, keepdims=True)      # (tile, 1)   [XLU reduce]
    inv = jax.lax.rsqrt(var + eps)                     # rsqrt       [EUP]
    w = w_ref[0:1, :].astype(jnp.float32)              # (1, hidden) from (8, hidden) tile
    o_ref[...] = (x * inv * w).astype(o_ref.dtype)     # cast back to input dtype


def _sublane_multiple(dtype) -> int:
    # Native min sublane tile: f32 -> 8, bf16/f16 -> 16, int8/fp8 -> 32.
    itemsize = jnp.dtype(dtype).itemsize
    return max(8, 32 // max(itemsize, 1))


def _choose_tile(rows: int, hidden: int, dtype, tile_rows_override) -> int:
    sub = _sublane_multiple(dtype)
    if tile_rows_override is not None:
        if rows <= tile_rows_override:
            return rows
        return max(sub, (tile_rows_override // sub) * sub)
    if rows <= _SINGLE_BLOCK_MAX_ROWS:
        # Tiny input: one full-array block (no (8,128) divisibility requirement).
        return rows
    itemsize = jnp.dtype(dtype).itemsize
    tile_by_bytes = _TARGET_BLOCK_BYTES // (hidden * itemsize)   # constant bytes/block
    tile_by_steps = rows // _MIN_GRID_STEPS                      # keep >= 8 grid steps
    tile = min(tile_by_bytes, max(tile_by_steps, sub))
    return max(sub, (tile // sub) * sub)


def simplified_rmsnorm(x, weight, *, eps=EPS, tile_rows=None):
    """x: [..., hidden], weight: [hidden] or pre-broadcast [8, hidden]."""
    orig_shape = x.shape
    hidden = orig_shape[-1]

    if weight.ndim == 1:
        assert weight.shape == (hidden,)
        w2d = jnp.broadcast_to(weight.reshape(1, hidden), (8, hidden))
    else:
        assert weight.shape == (8, hidden)
        w2d = weight

    x2d = x.reshape(-1, hidden)
    rows = x2d.shape[0]
    if rows == 0:
        return x

    tile = _choose_tile(rows, hidden, x.dtype, tile_rows)
    grid = (pl.cdiv(rows, tile),)   # Pallas clips the partial edge block.

    x_bytes = rows * hidden * jnp.dtype(x.dtype).itemsize
    w_bytes = grid[0] * 8 * hidden * jnp.dtype(w2d.dtype).itemsize
    cost = pl.CostEstimate(
        flops=5 * rows * hidden,
        transcendentals=rows,
        bytes_accessed=2 * x_bytes + w_bytes,
    )

    out = pl.pallas_call(
        functools.partial(_rmsnorm_kernel, eps=eps),
        out_shape=jax.ShapeDtypeStruct((rows, hidden), x.dtype),
        grid_spec=pltpu.PrefetchScalarGridSpec(
            num_scalar_prefetch=0,
            grid=grid,
            in_specs=[
                pl.BlockSpec((tile, hidden), lambda i: (i, 0)),
                pl.BlockSpec((8, hidden), lambda i: (0, 0)),
            ],
            out_specs=pl.BlockSpec((tile, hidden), lambda i: (i, 0)),
        ),
        compiler_params=pltpu.CompilerParams(
            dimension_semantics=("parallel",),        # row axis shards across TCs (v7x)
            vmem_limit_bytes=_VMEM_LIMIT_BYTES,
        ),
        cost_estimate=cost,
    )(x2d, w2d)

    return out.reshape(orig_shape)


class SimplifiedRMSNorm:
    """Caches the (8, hidden) weight broadcast once, like a torch module."""

    def __init__(self, weight, eps=EPS):
        hidden = weight.shape[-1]
        self.eps = eps
        self.w2d = jnp.broadcast_to(weight.reshape(1, hidden), (8, hidden))

    def __call__(self, x, *, tile_rows=None):
        return simplified_rmsnorm(x, self.w2d, eps=self.eps, tile_rows=tile_rows)


def _reference(x, weight, eps=EPS):
    xf = x.astype(jnp.float32)
    var = jnp.mean(xf * xf, axis=-1, keepdims=True)
    return (weight.astype(jnp.float32) * (xf * jax.lax.rsqrt(var + eps))).astype(x.dtype)


if __name__ == "__main__":
    key = jax.random.PRNGKey(0)

    # Deterministic parameter init: torch.ones(hidden_size)
    weight = jnp.ones((HIDDEN_SIZE,), dtype=jnp.float32)
    norm = SimplifiedRMSNorm(weight)

    # --- f32, tiny input (batch=2, seq=8): single full-array block path ---
    x = jax.random.normal(key, (2, 8, HIDDEN_SIZE), dtype=jnp.float32)
    out = norm(x)
    jax.block_until_ready(out)
    assert out.shape == x.shape and out.dtype == x.dtype
    assert jnp.allclose(out, _reference(x, weight), atol=1e-5, rtol=1e-5)

    # --- f32, medium input (600 rows): auto multi-tile pipelined path with a
    #     partial edge block (tile=72, grid=9) ---
    k2 = jax.random.PRNGKey(1)
    x2 = jax.random.normal(k2, (3, 200, HIDDEN_SIZE), dtype=jnp.float32)
    out2 = norm(x2)
    jax.block_until_ready(out2)
    assert jnp.allclose(out2, _reference(x2, weight), atol=1e-5, rtol=1e-5)

    # --- bf16, medium input (600 rows): sublane multiple 16, partial edge block ---
    x3 = jax.random.normal(k2, (2, 300, HIDDEN_SIZE)).astype(jnp.bfloat16)
    out3 = norm(x3)
    jax.block_until_ready(out3)
    assert out3.dtype == jnp.bfloat16
    assert jnp.allclose(out3.astype(jnp.float32),
                        _reference(x3, weight).astype(jnp.float32),
                        atol=2e-2, rtol=2e-2)

    # --- explicit tile override (forces small multi-tile grid, 1-D weight path) ---
    out4 = simplified_rmsnorm(x3, weight, tile_rows=16)
    jax.block_until_ready(out4)
    assert jnp.allclose(out4.astype(jnp.float32),
                        _reference(x3, weight).astype(jnp.float32),
                        atol=2e-2, rtol=2e-2)

    print("KERNEL_OK")
</pallas_src>

<mosaic_0001>
module attributes {stable_mosaic.version = 11 : i64} {
  func.func @_rmsnorm_kernel(%arg0: i32, %arg1: memref<16x128xf32, #tpu.memory_space<vmem>>, %arg2: memref<8x128xf32, #tpu.memory_space<vmem>>, %arg3: memref<16x128xf32, #tpu.memory_space<vmem>>) attributes {dimension_semantics = [#tpu.dimension_semantics<parallel>], iteration_bounds = array<i64: 1>, scalar_prefetch = 0 : i64, scratch_operands = 0 : i64, tpu.core_type = #tpu.core_type<tc>, window_params = [{transform_indices = @transform_0, window_bounds = array<i64: 16, 128>}, {pipeline_mode = #tpu.pipeline_mode<synchronous>, transform_indices = @transform_1, window_bounds = array<i64: 8, 128>}, {transform_indices = @transform_2, window_bounds = array<i64: 16, 128>}]} {
    %c0 = arith.constant 0 : index
    %c0_0 = arith.constant 0 : index
    %0 = vector.load %arg1[%c0, %c0_0] : memref<16x128xf32, #tpu.memory_space<vmem>>, vector<16x128xf32>
    %1 = arith.mulf %0, %0 : vector<16x128xf32>
    %cst = arith.constant dense<0.000000e+00> : vector<16xf32>
    %2 = vector.multi_reduction <add>, %1, %cst [1] : vector<16x128xf32> to vector<16xf32>
    %3 = vector.shape_cast %2 : vector<16xf32> to vector<16x1xf32>
    %cst_1 = arith.constant 1.280000e+02 : f32
    %4 = vector.broadcast %cst_1 : f32 to vector<16x1xf32>
    %5 = arith.divf %3, %4 : vector<16x1xf32>
    %cst_2 = arith.constant 9.99999997E-7 : f32
    %6 = vector.broadcast %cst_2 : f32 to vector<16x1xf32>
    %7 = arith.addf %5, %6 : vector<16x1xf32>
    %8 = math.rsqrt %7 : vector<16x1xf32>
    %c0_3 = arith.constant 0 : index
    %c0_4 = arith.constant 0 : index
    %9 = vector.load %arg2[%c0_3, %c0_4] : memref<8x128xf32, #tpu.memory_space<vmem>>, vector<1x128xf32>
    %10 = vector.broadcast %8 : vector<16x1xf32> to vector<16x128xf32>
    %11 = arith.mulf %0, %10 : vector<16x128xf32>
    %12 = vector.broadcast %9 : vector<1x128xf32> to vector<16x128xf32>
    %13 = arith.mulf %11, %12 : vector<16x128xf32>
    %c0_5 = arith.constant 0 : index
    %c0_6 = arith.constant 0 : index
    %14 = vector.load %arg3[%c0_5, %c0_6] : memref<16x128xf32, #tpu.memory_space<vmem>>, vector<16x128xf32>
    tpu.vector_store %arg3[%c0_5, %c0_6], %13 {strides = array<i32>} : memref<16x128xf32, #tpu.memory_space<vmem>>, vector<16x128xf32>,
    return
  }
  func.func @transform_0(%arg0: i32) -> (i32, i32) {
    %c0_i32 = arith.constant 0 : i32
    %c0_i32_0 = arith.constant 0 : i32
    return %arg0, %c0_i32 : i32, i32
  }
  func.func @transform_1(%arg0: i32) -> (i32, i32) {
    %c0_i32 = arith.constant 0 : i32
    %c0_i32_0 = arith.constant 0 : i32
    %c0_i32_1 = arith.constant 0 : i32
    return %c0_i32, %c0_i32_0 : i32, i32
  }
  func.func @transform_2(%arg0: i32) -> (i32, i32) {
    %c0_i32 = arith.constant 0 : i32
    %c0_i32_0 = arith.constant 0 : i32
    return %arg0, %c0_i32 : i32, i32
  }
}

</mosaic_0001>

<bundles_post_ra>
// kernel: tpu_custom_call.1
= control target key start
LH: loop header
LB: loop body
LE: loop exit
PB: predicated region body
PF: predicated region fallthrough
CT: control target
= control target key end

     0   :  { %7 = vsyncpa [#allocation3], 0  ;;  %s193_s0 = inlined_call_operand.hbm [shape: f32[16,128], index: 0, kind: input, shape index: {}]   ;;  %s194_s1 = inlined_call_operand.hbm [shape: f32[8,128], index: 1, kind: input, shape index: {}]   ;;  %s195_s2 = inlined_call_operand.hbm [shape: f32[16,128], index: 2, kind: output, shape index: {}]  }
   0x1   :  { %8 = vsyncpa [#allocation6], 0 }
   0x2   :  { %9 = vsyncpa [#allocation4], 0  ;;  %s158_s9 = smov [#allocation2]  }
   0x3   :  { %s15_s10 = sshll.u32 %s158_s9, 4  ;;  %s16_s10 = int_to_ptr.vmem [resolvable:$true] %s15_s10 }
   0x4   :  { %s100_s11 = scalar_lea.vmem %s16_s10, 256  ;;  %p105_p1 = scmp.lt.s32.totalorder %s16_s10, %s16_s10 }
   0x5   :  { %p101_p0 = scmp.ne.s32.totalorder %s16_s10, %s100_s11  ;;  %p106_p2 = scmp.lt.s32.totalorder %s100_s11, %s100_s11 }
   0x7   :  { %p107_p3 = por %p106_p2, %p105_p1 }
   0x9   :  { %p108_p4 = pnand %p107_p3, %p101_p0 }
   0xb   :  { %111 = shalt.err (!%p108_p4)
}
   0xc   :  { %s159_s12 = smov 128   ;;  %s160_s13 = smov 8  }
   0xd   :  { %21 = dma.hbm_to_vmem [thread:$0]  %s193_s0, 256, %s16_s10, [#allocation3], %s159_s12, %s159_s12, %s160_s13  }
   0xe   :  { %s161_s16 = smov [#allocation5]  }
   0xf   :  { %s28_s17 = sshll.u32 %s161_s16, 4  ;;  %s29_s17 = int_to_ptr.vmem [resolvable:$true] %s28_s17 }
  0x10   :  { %s120_s18 = scalar_lea.vmem %s29_s17, 128  ;;  %p125_p6 = scmp.lt.s32.totalorder %s29_s17, %s29_s17 }
  0x11   :  { %p121_p5 = scmp.ne.s32.totalorder %s29_s17, %s120_s18  ;;  %p126_p7 = scmp.lt.s32.totalorder %s120_s18, %s120_s18 }
  0x13   :  { %p127_p8 = por %p126_p7, %p125_p6 }
  0x15   :  { %p128_p9 = pnand %p127_p8, %p121_p5 }
  0x17   :  { %131 = shalt.err (!%p128_p9)
}
  0x18   :  { %31 = dma.hbm_to_vmem [thread:$0]  %s194_s1, 128, %s29_s17, [#allocation6]  }
  0x19   :  { %152 = dma.done.wait [#allocation3], 256  }
  0x1a   :  { %153 = vsyncadd [#allocation3], 4294967040 }
  0x1b   :  { %154 = dma.done.wait [#allocation6], 128  }
  0x1c   :  { %155 = vsyncadd [#allocation6], 4294967168  ;;  %v38_v0 = vld [vmem:[#allocation2] sm:$0xff]  ;;  %v39_v1 = vld [vmem:[#allocation2 + $0x8] sm:$0xff]  ;;  %s162_s0 = smov [#allocation7]  }
  0x1d   :  { %v40_v2 = vmul.f32 %v38_v0, %v38_v0  ;;  %v41_v3 = vmul.f32 %v39_v1, %v39_v1  ;;  %v82_v11 = vld [vmem:[#allocation5] ss:$0 sm:$0xff]  ;;  %s69_s1 = sshll.u32 %s162_s0, 4  ;;  %s70_s1 = int_to_ptr.vmem [resolvable:$true] %s69_s1 }
  0x1e   :  { %s132_s21 = scalar_lea.vmem %s70_s1, 256  ;;  %p137_p11 = scmp.lt.s32.totalorder %s70_s1, %s70_s1 }
  0x1f   :  { %42 = vadd.xlane.f32.xlu0 %v40_v2  ;;  %p133_p10 = scmp.ne.s32.totalorder %s70_s1, %s132_s21  ;;  %p138_p12 = scmp.lt.s32.totalorder %s132_s21, %s132_s21 }
  0x21   :  { %p139_p13 = por %p138_p12, %p137_p11 }
  0x23   :  { %44 = vadd.xlane.f32.xlu0 %v41_v3  ;;  %p140_p0 = pnand %p139_p13, %p133_p10 }
  0xa8   :  { %v43_v4 = vpop.xlane.xlu0 %42 }
  0xa9   :  { %v47_v5 = vmul.f32 0.0078125, %v43_v4 }
  0xab   :  { %v49_v6 = vadd.f32 1e-06, %v47_v5 }
  0xac   :  { %v45_v7 = vpop.xlane.xlu0 %44 }
  0xad   :  { %88 = vrsqrt.f32 %v49_v6  ;;  %v48_v8 = vmul.f32 0.0078125, %v45_v7 }
  0xaf   :  { %v50_v9 = vadd.f32 1e-06, %v48_v8 }
  0xb1   :  { %90 = vrsqrt.f32 %v50_v9 }
  0xba   :  { %v89_v10 = vpop.eup %88 }
  0xbb   :  { %v54_v12 = vmul.f32 %v89_v10, %v38_v0 }
  0xbd   :  { %v60_v13 = vmul.f32 %v82_v11, %v54_v12 }
  0xbe   :  { %v91_v14 = vpop.eup %90 }
  0xbf   :  { %v55_v15 = vmul.f32 %v91_v14, %v39_v1  ;;  %62 = vst [vmem:[#allocation7] sm:$0xff] %v60_v13 }
  0xc1   :  { %v61_v16 = vmul.f32 %v82_v11, %v55_v15 }
  0xc3   :  { %63 = vst [vmem:[#allocation7 + $0x8] sm:$0xff] %v61_v16 }
  0xc4   :  { %143 = shalt.err (!%p140_p0)
}
  0xc5   :  { %75 = dma.vmem_to_hbm [thread:$0]  %s70_s1, 256, %s195_s2, [#allocation4], %s159_s12, %s159_s12, %s160_s13  }
  0xc6   :  { %156 = dma.done.wait [#allocation4], 256  }
  0xc7   :  { %157 = vsyncadd [#allocation4], 4294967040 }
  0xc8   :  { %79 = vsyncpa [#allocation3], 1 }
  0xc9   :  { %80 = vsyncpa [#allocation6], 1 }
  0xca   :  { %81 = vsyncpa [#allocation4], 1 }

</bundles_post_ra>
